<compile_context>
chip_gen: v7x
topology: tpu7x:2x2x1
jax: 0.10.0
libtpu: 0.0.40
codegen_flags: <defaults>
</compile_context>

<pallas_src>
import functools

import numpy as np
import jax
import jax.numpy as jnp
from jax.experimental import pallas as pl
from jax.experimental.pallas import tpu as pltpu


def _round_up(v, m):
    return ((v + m - 1) // m) * m


# ------------------------------- Pallas kernel -------------------------------

def _drop_path_kernel(x_ref, mask_ref, o_ref, *, inv_keep):
    # x_ref: (TB, TF) activation tile; mask_ref: (TB, 1) per-sample keep mask in {0, 1}.
    # Fuse the 1/keep_prob rescale into the broadcast multiply: one pass over HBM.
    scale = mask_ref[...] * inv_keep                      # (TB, 1) broadcasts over lanes
    o_ref[...] = x_ref[...] * scale.astype(x_ref.dtype)


def pallas_drop_path_apply(x, keep_mask, keep_prob):
    """out = x * keep_mask[:, None, ...] / keep_prob, tiled lane-dense on TPU."""
    B = x.shape[0]
    F = int(np.prod(x.shape[1:])) if x.ndim > 1 else 1
    x2 = x.reshape(B, F)

    # Tile selection: big, (8,128)-aligned blocks. 256x2048 f32 = 2 MiB per block;
    # double-buffered input + output ~= 8 MiB -> fits every generation's scoped VMEM.
    TB = min(256, _round_up(B, 8))
    TF = min(2048, _round_up(F, 128))
    Bp, Fp = _round_up(B, TB), _round_up(F, TF)

    if (Bp, Fp) != (B, F):                                # pad instead of "one giant block"
        x2 = jnp.pad(x2, ((0, Bp - B), (0, Fp - F)))
    m = keep_mask.reshape(B, 1).astype(x.dtype)
    if Bp != B:
        m = jnp.pad(m, ((0, Bp - B), (0, 0)))

    out = pl.pallas_call(
        functools.partial(_drop_path_kernel, inv_keep=float(1.0 / keep_prob)),
        out_shape=jax.ShapeDtypeStruct((Bp, Fp), x.dtype),
        grid=(Bp // TB, Fp // TF),
        in_specs=[
            pl.BlockSpec((TB, TF), lambda i, j: (i, j)),
            pl.BlockSpec((TB, 1), lambda i, j: (i, 0)),
        ],
        out_specs=pl.BlockSpec((TB, TF), lambda i, j: (i, j)),
        compiler_params=pltpu.CompilerParams(
            dimension_semantics=("parallel", "parallel")),
    )(x2, m)

    return out[:B, :F].reshape(x.shape)


# ------------------------------- module wrapper -------------------------------

def drop_path(x, drop_prob: float = 0.0, training: bool = False, *, key=None):
    """JAX/Pallas port of drop_path (stochastic depth per sample)."""
    if drop_prob == 0.0 or not training:
        return x
    keep_prob = 1.0 - drop_prob
    if key is None:
        raise ValueError("drop_path with drop_prob>0 and training=True requires a PRNG key")
    # Same construction as torch: floor(keep_prob + U[0,1)) == Bernoulli(keep_prob).
    # TODO(synk): bit-exact reproduction of torch.rand is not possible; the mask is drawn
    #             with jax.random using identical distribution/semantics.
    u = jax.random.uniform(key, (x.shape[0],), dtype=jnp.float32)
    keep_mask = jnp.floor(keep_prob + u)
    return pallas_drop_path_apply(x, keep_mask, keep_prob)


class DropPath:
    """Drop paths (Stochastic Depth) per sample (main path of residual blocks)."""

    def __init__(self, drop_prob=None):
        self.drop_prob = drop_prob
        self.training = True

    def __call__(self, x, *, key=None):
        return drop_path(x, self.drop_prob or 0.0, self.training, key=key)


# --------------------------- pure-JAX reference -------------------------------

def ref_drop_path(x, keep_mask, keep_prob):
    shape = (x.shape[0],) + (1,) * (x.ndim - 1)
    return x / keep_prob * keep_mask.reshape(shape).astype(x.dtype)


# ------------------------------------ main ------------------------------------

if __name__ == "__main__":
    key = jax.random.PRNGKey(0)
    kx, km = jax.random.split(key)
    x = jax.random.normal(kx, (8, 4, 16, 16), jnp.float32)   # (batch, C, H, W)

    # 1) identity paths (eval mode / drop_prob == 0) must return x untouched.
    assert drop_path(x, 0.0, True) is x
    assert drop_path(x, 0.25, False) is x

    # 2) training path: Pallas kernel vs pure-JAX reference using the same mask.
    drop_prob = 0.25
    keep_prob = 1.0 - drop_prob
    module = DropPath(drop_prob)            # training=True by default
    out = jax.block_until_ready(module(x, key=km))

    u = jax.random.uniform(km, (x.shape[0],), dtype=jnp.float32)
    keep_mask = jnp.floor(keep_prob + u)
    ref = ref_drop_path(x, keep_mask, keep_prob)

    assert out.shape == x.shape
    assert jnp.allclose(out, ref, rtol=1e-6, atol=1e-6), "Pallas DropPath mismatch vs reference"

    # sanity: every sample is either fully dropped (all zeros) or exactly x / keep_prob
    flat_out = out.reshape(x.shape[0], -1)
    flat_x = x.reshape(x.shape[0], -1)
    dropped = jnp.all(flat_out == 0.0, axis=1)
    kept = jnp.all(jnp.abs(flat_out - flat_x / keep_prob) < 1e-5, axis=1)
    assert bool(jnp.all(dropped | kept)), "each sample must be fully kept or fully dropped"

    print("KERNEL_OK")
</pallas_src>

<mosaic_0001>
module attributes {stable_mosaic.version = 11 : i64} {
  func.func @_drop_path_kernel(%arg0: i32, %arg1: i32, %arg2: memref<8x1024xf32, #tpu.memory_space<vmem>>, %arg3: memref<8x1xf32, #tpu.memory_space<vmem>>, %arg4: memref<8x1024xf32, #tpu.memory_space<vmem>>) attributes {dimension_semantics = [#tpu.dimension_semantics<parallel>, #tpu.dimension_semantics<parallel>], iteration_bounds = array<i64: 1, 1>, scalar_prefetch = 0 : i64, scratch_operands = 0 : i64, tpu.core_type = #tpu.core_type<tc>, window_params = [{transform_indices = @transform_0, window_bounds = array<i64: 8, 1024>}, {transform_indices = @transform_1, window_bounds = array<i64: 8, 1>}, {transform_indices = @transform_2, window_bounds = array<i64: 8, 1024>}]} {
    %c0 = arith.constant 0 : index
    %c0_0 = arith.constant 0 : index
    %0 = vector.load %arg3[%c0, %c0_0] : memref<8x1xf32, #tpu.memory_space<vmem>>, vector<8x1xf32>
    %cst = arith.constant 1.33333337 : f32
    %1 = vector.broadcast %cst : f32 to vector<8x1xf32>
    %2 = arith.mulf %0, %1 : vector<8x1xf32>
    %c0_1 = arith.constant 0 : index
    %c0_2 = arith.constant 0 : index
    %3 = vector.load %arg2[%c0_1, %c0_2] : memref<8x1024xf32, #tpu.memory_space<vmem>>, vector<8x1024xf32>
    %4 = vector.broadcast %2 : vector<8x1xf32> to vector<8x1024xf32>
    %5 = arith.mulf %3, %4 : vector<8x1024xf32>
    %c0_3 = arith.constant 0 : index
    %c0_4 = arith.constant 0 : index
    %6 = vector.load %arg4[%c0_3, %c0_4] : memref<8x1024xf32, #tpu.memory_space<vmem>>, vector<8x1024xf32>
    tpu.vector_store %arg4[%c0_3, %c0_4], %5 {strides = array<i32>} : memref<8x1024xf32, #tpu.memory_space<vmem>>, vector<8x1024xf32>,
    return
  }
  func.func @transform_0(%arg0: i32, %arg1: i32) -> (i32, i32) {
    %c0_i32 = arith.constant 0 : i32
    return %arg0, %arg1 : i32, i32
  }
  func.func @transform_1(%arg0: i32, %arg1: i32) -> (i32, i32) {
    %c0_i32 = arith.constant 0 : i32
    %c0_i32_0 = arith.constant 0 : i32
    return %arg0, %c0_i32 : i32, i32
  }
  func.func @transform_2(%arg0: i32, %arg1: i32) -> (i32, i32) {
    %c0_i32 = arith.constant 0 : i32
    return %arg0, %arg1 : i32, i32
  }
}

</mosaic_0001>

<bundles_post_ra>
// kernel: tpu_custom_call.1
= control target key start
LH: loop header
LB: loop body
LE: loop exit
PB: predicated region body
PF: predicated region fallthrough
CT: control target
= control target key end

     0   :  { %7 = vsyncpa [#allocation3], 0  ;;  %s167_s0 = inlined_call_operand.hbm [shape: f32[8,1024], index: 0, kind: input, shape index: {}]   ;;  %s168_s1 = inlined_call_operand.vmem [shape: f32[8,1], index: 1, kind: input, shape index: {}]   ;;  %s169_s2 = inlined_call_operand.hbm [shape: f32[8,1024], index: 2, kind: output, shape index: {}]  }
   0x1   :  { %8 = vsyncpa [#allocation4], 0  ;;  %s122_s9 = smov [#allocation2]   ;;  %s74_s13 = scalar_lea.hbm %s167_s0, 1024 }
   0x2   :  { %s15_s10 = sshll.u32 %s122_s9, 4  ;;  %p75_p0 = scmp.ne.s32.totalorder %s167_s0, %s74_s13  ;;  %s16_s10 = int_to_ptr.vmem [resolvable:$true] %s15_s10 }
   0x3   :  { %p78_p1 = scmp.lt.u32.totalorder %s74_s13, %s167_s0 }
   0x5   :  { %p80_p2 = pnand %p78_p1, %p75_p0 }
   0x7   :  { %83 = shalt.err (!%p80_p2)
}
   0x8   :  { %s84_s18 = scalar_lea.vmem %s16_s10, 1024  ;;  %p89_p4 = scmp.lt.s32.totalorder %s16_s10, %s16_s10 }
   0x9   :  { %p85_p3 = scmp.ne.s32.totalorder %s16_s10, %s84_s18  ;;  %p90_p5 = scmp.lt.s32.totalorder %s84_s18, %s84_s18 }
   0xb   :  { %p91_p6 = por %p90_p5, %p89_p4 }
   0xd   :  { %p92_p7 = pnand %p91_p6, %p85_p3 }
   0xf   :  { %95 = shalt.err (!%p92_p7)
}
  0x10   :  { %18 = dma.hbm_to_vmem [thread:$0]  %s167_s0, 1024, %s16_s10, [#allocation3]  }
  0x11   :  { %118 = dma.done.wait [#allocation3], 1024  }
  0x12   :  { %119 = vsyncadd [#allocation3], 4294966272  ;;  %v123_v0 = vmov 0   ;;  %v24_v1 = vld [vmem:[%s168_s1] sm:$0xff]  ;;  %v27_v4 = vld [vmem:[#allocation2 + $0x8] sm:$0xff]  ;;  %s124_s23 = smov [#allocation5]  }
  0x13   :  { %73 = vset.pattern.permute.xlu0 %v123_v0  ;;  %v25_v2 = vmul.f32 1.3333334, %v24_v1  ;;  %v26_v3 = vld [vmem:[#allocation2] sm:$0xff]  ;;  %v28_v5 = vld [vmem:[#allocation2 + $0x10] sm:$0xff]  ;;  %v29_v6 = vld [vmem:[#allocation2 + $0x18] sm:$0xff]  ;;  %s61_s0 = sshll.u32 %s124_s23, 4  ;;  %s62_s0 = int_to_ptr.vmem [resolvable:$true] %s61_s0 }
  0x14   :  { %v30_v7 = vld [vmem:[#allocation2 + $0x20] sm:$0xff]  ;;  %v31_v8 = vld [vmem:[#allocation2 + $0x28] sm:$0xff]  ;;  %v32_v9 = vld [vmem:[#allocation2 + $0x30] sm:$0xff]  ;;  %s96_s1 = scalar_lea.vmem %s62_s0, 1024  ;;  %p101_p9 = scmp.lt.s32.totalorder %s62_s0, %s62_s0 }
  0x15   :  { %36 = vperm.xlu0 %73, %v25_v2   ;;  %v33_v10 = vld [vmem:[#allocation2 + $0x38] sm:$0xff]  ;;  %p97_p8 = scmp.ne.s32.totalorder %s62_s0, %s96_s1  ;;  %p102_p10 = scmp.lt.s32.totalorder %s96_s1, %s96_s1 }
  0x17   :  { %p103_p11 = por %p102_p10, %p101_p9 }
  0x19   :  { %p104_p12 = pnand %p103_p11, %p97_p8 }
  0x94   :  { %v37_v11 = vpop.permute.xlu0 %36 }
  0x95   :  { %v39_v12 = vmul.f32 %v37_v11, %v26_v3  ;;  %v40_v13 = vmul.f32 %v37_v11, %v27_v4  ;;  %v41_v14 = vmul.f32 %v37_v11, %v28_v5  ;;  %v42_v15 = vmul.f32 %v37_v11, %v29_v6 }
  0x96   :  { %v43_v16 = vmul.f32 %v37_v11, %v30_v7  ;;  %v44_v17 = vmul.f32 %v37_v11, %v31_v8  ;;  %v45_v18 = vmul.f32 %v37_v11, %v32_v9  ;;  %v46_v19 = vmul.f32 %v37_v11, %v33_v10 }
  0x97   :  { %47 = vst [vmem:[#allocation5] sm:$0xff] %v39_v12  ;;  %48 = vst [vmem:[#allocation5 + $0x8] sm:$0xff] %v40_v13 }
  0x98   :  { %49 = vst [vmem:[#allocation5 + $0x10] sm:$0xff] %v41_v14  ;;  %50 = vst [vmem:[#allocation5 + $0x18] sm:$0xff] %v42_v15 }
  0x99   :  { %51 = vst [vmem:[#allocation5 + $0x20] sm:$0xff] %v43_v16  ;;  %52 = vst [vmem:[#allocation5 + $0x28] sm:$0xff] %v44_v17 }
  0x9a   :  { %53 = vst [vmem:[#allocation5 + $0x30] sm:$0xff] %v45_v18  ;;  %54 = vst [vmem:[#allocation5 + $0x38] sm:$0xff] %v46_v19 }
  0x9b   :  { %107 = shalt.err (!%p104_p12)
}
  0x9c   :  { %s108_s26 = scalar_lea.hbm %s169_s2, 1024 }
  0x9d   :  { %p109_p13 = scmp.ne.s32.totalorder %s169_s2, %s108_s26  ;;  %p112_p0 = scmp.lt.u32.totalorder %s108_s26, %s169_s2 }
  0x9f   :  { %p114_p1 = pnand %p112_p0, %p109_p13 }
  0xa1   :  { %117 = shalt.err (!%p114_p1)
}
  0xa2   :  { %64 = dma.vmem_to_hbm [thread:$0]  %s62_s0, 1024, %s169_s2, [#allocation4]  }
  0xa3   :  { %120 = dma.done.wait [#allocation4], 1024  }
  0xa4   :  { %121 = vsyncadd [#allocation4], 4294966272 }
  0xa5   :  { %68 = vsyncpa [#allocation3], 1 }
  0xa6   :  { %69 = vsyncpa [#allocation4], 1 }

</bundles_post_ra>
